<compile_context>
chip_gen: v5e
topology: v5e:2x2
jax: 0.10.0
libtpu: 0.0.40
codegen_flags: <defaults>
</compile_context>

<pallas_src>
import math

import jax
import jax.numpy as jnp
import numpy as np
from jax import lax
from jax.experimental import pallas as pl
from jax.experimental.pallas import tpu as pltpu

NEG_SLOPE = 0.01  # nn.LeakyReLU default


def _leaky_relu(x):
    return jnp.where(x > 0, x, NEG_SLOPE * x)


def _round_up(x, m):
    return (x + m - 1) // m * m


def _vmem_capacity_bytes():
    try:
        info = pltpu.get_tpu_info()
        cap = getattr(info, "vmem_capacity_bytes", None)
        if cap:
            return int(cap)
    except Exception:
        pass
    return 64 << 20


def _make_kernel(deeper: bool, compact_mask: bool, b_tile: int, nb: int):
    """Aligner kernel. Grid = (Q, nb); the output 'b' axis iterates fastest."""

    def kernel(*args):
        idx = 0
        dec_ref = args[idx]; idx += 1          # bf16 [1, S_pad, D] (pre-mixed)
        wcat1_ref = args[idx]; idx += 1        # bf16 [D, 2*half_pad]
        bcat1_ref = args[idx]; idx += 1        # f32  [1, 2*half_pad]
        if deeper:
            w2s_ref, b2s_ref, w2t_ref, b2t_ref = args[idx:idx + 4]
            idx += 4
        wbilT_ref = args[idx]; idx += 1        # bf16 [H_pad, H_pad] (= W_bil.T padded)
        mask_ref = args[idx]; idx += 1
        out_ref = args[idx]; idx += 1
        tT_scr = args[idx]; idx += 1           # bf16 [H_pad, S_pad]
        h2_scr = args[idx]; idx += 1           # bf16 [S_pad, H_pad]

        b = pl.program_id(1)
        half = wcat1_ref.shape[1] // 2

        # ---- per-q work: projections + (h1 @ W_bil)^T, cached in VMEM ----
        @pl.when(b == 0)
        def _():
            x = dec_ref[0]                                            # [S_pad, D] bf16
            # Fused src||tgt layer-1: one wide bf16 MXU matmul, f32 accumulate.
            hcat = jnp.dot(x, wcat1_ref[...],
                           preferred_element_type=jnp.float32)
            hcat = _leaky_relu(hcat + bcat1_ref[...])
            h1 = hcat[:, :half]       # split point is a multiple of 128 (padded)
            h2 = hcat[:, half:]
            if deeper:
                h1 = _leaky_relu(
                    jnp.dot(h1.astype(jnp.bfloat16), w2s_ref[...],
                            preferred_element_type=jnp.float32) + b2s_ref[...])
                h2 = _leaky_relu(
                    jnp.dot(h2.astype(jnp.bfloat16), w2t_ref[...],
                            preferred_element_type=jnp.float32) + b2t_ref[...])

            # tT[y, a] = sum_x W_bil[x, y] * h1[a, x]   (computed once per q).
            # The transposed-rhs contraction happens here, once per q, so the
            # per-b-tile matmul below is a canonical [M,K]@[K,N].
            tT = lax.dot_general(wbilT_ref[...], h1.astype(jnp.bfloat16),
                                 dimension_numbers=(((1,), (1,)), ((), ())),
                                 preferred_element_type=jnp.float32)
            tT_scr[...] = tT.astype(jnp.bfloat16)
            h2_scr[...] = h2.astype(jnp.bfloat16)

        # ---- per-b-tile: aligned[b, a] = sum_y h2[b, y] * tT[y, a] ----
        if nb == 1:
            h2_tile = h2_scr[...]
        else:
            start = pl.multiple_of(b * b_tile, b_tile)
            h2_tile = h2_scr[pl.ds(start, b_tile), :]

        aligned = jnp.dot(h2_tile, tT_scr[...],
                          preferred_element_type=jnp.float32)        # [b_tile, S_pad]

        if compact_mask:
            m = mask_ref[0]                        # [1, S_pad] i32, broadcast over b
        else:
            m = mask_ref[0].astype(jnp.int32)      # [b_tile, S_pad]
        masked = jnp.where(m != 0, -jnp.inf, aligned)
        out_ref[0] = masked.astype(out_ref.dtype)

    return kernel


def bilinear_aligner_forward(dec_h_stack, pointer_mask, params, *,
                             deeper=False, b_tile=None, out_dtype=jnp.bfloat16):
    """dec_h_stack: [L, Q, S, D] float32 (last `bart_layers` decoder states).

    pointer_mask: either the compact pre-expand mask [Q, 1, S] (broadcast over
    the 'b' axis, as `expand_as` would) or the fully expanded [Q, S, S] mask.
    Nonzero = masked (-inf). Returns aligned [Q, S, S] in `out_dtype`.
    """
    L, Q, S, D = dec_h_stack.shape
    w_bil = params["bilinear_weight"]
    H = w_bil.shape[0]

    # ---- ScalarMix folded host-side: kernel streams a single [Q,S,D] slab ----
    mix_w = (jax.nn.softmax(params["scalar_mix_scalars"]) *
             params["scalar_mix_gamma"]).astype(jnp.float32)
    mixed = jnp.einsum("l,lqsd->qsd", mix_w, dec_h_stack)

    # ---- tiling: lane-dense S_pad (>=128); b_tile defaults 256 -> 128 ----
    if b_tile is None:
        S_pad = max(_round_up(S, 128), 128)
        b_tile = min(256, S_pad)
        while S_pad % b_tile:
            b_tile //= 2
    else:
        assert b_tile % 32 == 0, "b_tile must be a multiple of 32"
        step = b_tile * 128 // math.gcd(b_tile, 128)
        S_pad = _round_up(max(S, 128), step)
    nb = S_pad // b_tile

    pad_s = S_pad - S
    if pad_s:
        mixed = jnp.pad(mixed, ((0, 0), (0, pad_s), (0, 0)))
    mixed = mixed.astype(jnp.bfloat16)

    # ---- mask: compact [Q,1,S] (broadcast) or full [Q,S,S]; pad cols masked ----
    if pointer_mask.ndim == 3 and pointer_mask.shape[1] == 1:
        compact = True
        m = pointer_mask[:, 0, :] != 0
        if pad_s:
            m = jnp.pad(m, ((0, 0), (0, pad_s)), constant_values=True)
        mask = m.astype(jnp.int32)[:, None, :]                 # [Q, 1, S_pad]
    else:
        compact = False
        m = pointer_mask != 0
        if pad_s:
            m = jnp.pad(m, ((0, 0), (0, pad_s), (0, pad_s)), constant_values=True)
        mask = m.astype(jnp.int8)                              # [Q, S_pad, S_pad]

    # ---- weights: pad widths to multiples of 128, fuse src||tgt layer-1 ----
    H_pad = _round_up(H, 128)
    (w1s, b1s) = params["src_proj"][0]
    (w1t, b1t) = params["tgt_proj"][0]
    half1_pad = H_pad if not deeper else _round_up(w1s.shape[1], 128)

    def pad_cols(w, b, width):
        pc = width - w.shape[1]
        if pc:
            w = jnp.pad(w, ((0, 0), (0, pc)))
            b = jnp.pad(b, ((0, 0), (0, pc)))
        return w, b

    w1s_p, b1s_p = pad_cols(w1s, b1s, half1_pad)
    w1t_p, b1t_p = pad_cols(w1t, b1t, half1_pad)
    wcat1 = jnp.concatenate([w1s_p, w1t_p], axis=1).astype(jnp.bfloat16)
    bcat1 = jnp.concatenate([b1s_p, b1t_p], axis=1).astype(jnp.float32)
    weight_arrays = [wcat1, bcat1]
    if deeper:
        def pad_l2(w, b):
            w = jnp.pad(w, ((0, half1_pad - w.shape[0]), (0, H_pad - w.shape[1])))
            b = jnp.pad(b, ((0, 0), (0, H_pad - b.shape[1])))
            return w.astype(jnp.bfloat16), b.astype(jnp.float32)
        w2s_p, b2s_p = pad_l2(*params["src_proj"][1])
        w2t_p, b2t_p = pad_l2(*params["tgt_proj"][1])
        weight_arrays += [w2s_p, b2s_p, w2t_p, b2t_p]
    wbil_p = jnp.pad(w_bil, ((0, H_pad - H), (0, H_pad - H)))
    wbilT = wbil_p.T.astype(jnp.bfloat16)                      # [H_pad(y), H_pad(x)]
    weight_arrays.append(wbilT)

    # ---- specs ----
    in_specs = [pl.BlockSpec((1, S_pad, D), lambda q, b: (q, 0, 0))]   # pre-mixed dec
    for w in weight_arrays:                                            # constant weights
        in_specs.append(pl.BlockSpec(w.shape, lambda q, b, n=w.ndim: (0,) * n))
    if compact:
        in_specs.append(pl.BlockSpec((1, 1, S_pad), lambda q, b: (q, 0, 0)))
    else:
        in_specs.append(pl.BlockSpec((1, b_tile, S_pad), lambda q, b: (q, b, 0)))
    out_specs = pl.BlockSpec((1, b_tile, S_pad), lambda q, b: (q, b, 0))

    scratch_shapes = [
        pltpu.VMEM((H_pad, S_pad), jnp.bfloat16),   # tT = (h1 @ W_bil)^T
        pltpu.VMEM((S_pad, H_pad), jnp.bfloat16),   # h2
    ]

    # ---- VMEM budget & cost estimate (generation-aware cap with headroom) ----
    out_itemsize = np.dtype(out_dtype).itemsize
    weight_bytes = sum(int(a.size) * a.dtype.itemsize for a in weight_arrays)
    dec_block = S_pad * D * 2
    out_block = b_tile * S_pad * out_itemsize
    mask_block = (S_pad * 4) if compact else (b_tile * S_pad)
    scratch_bytes = 2 * S_pad * H_pad * 2
    vmem_est = (2 * (dec_block + out_block + mask_block + weight_bytes)
                + scratch_bytes + (8 << 20))
    cap = _vmem_capacity_bytes()
    vmem_limit = int(min(max(vmem_est, 32 << 20), cap - (12 << 20)))

    flops = Q * (2 * S_pad * D * (2 * half1_pad)
                 + (4 * S_pad * half1_pad * H_pad if deeper else 0)
                 + 2 * S_pad * H_pad * H_pad
                 + 2 * S_pad * S_pad * H_pad)
    bytes_accessed = (int(mixed.size) * 2
                      + int(mask.size) * mask.dtype.itemsize
                      + Q * S_pad * S_pad * out_itemsize
                      + weight_bytes)

    kernel = _make_kernel(deeper, compact, b_tile, nb)
    out = pl.pallas_call(
        kernel,
        out_shape=jax.ShapeDtypeStruct((Q, S_pad, S_pad), out_dtype),
        grid=(Q, nb),
        in_specs=in_specs,
        out_specs=out_specs,
        scratch_shapes=scratch_shapes,
        compiler_params=pltpu.CompilerParams(
            dimension_semantics=("parallel", "arbitrary"),
            vmem_limit_bytes=vmem_limit),
        cost_estimate=pl.CostEstimate(
            flops=int(flops), transcendentals=0,
            bytes_accessed=int(bytes_accessed)),
    )(mixed, *weight_arrays, mask)

    # Padded columns are -inf (force-masked); padded rows are dropped here.
    return out[:, :S, :S]


def reference_forward(dec_h_stack, pointer_mask, params, *, deeper=False):
    """Pure-JAX f32 reference of the PyTorch forward (is_generating=False)."""
    hp = lax.Precision.HIGHEST
    mix_w = jax.nn.softmax(params["scalar_mix_scalars"]) * params["scalar_mix_gamma"]
    mixed = jnp.einsum("l,lqsd->qsd", mix_w, dec_h_stack, precision=hp)

    def project(x, layers):
        h = x
        for (w, b) in layers:
            h = _leaky_relu(jnp.einsum("qsd,dh->qsh", h, w, precision=hp) + b)
        return h

    h1 = project(mixed, params["src_proj"])
    h2 = project(mixed, params["tgt_proj"])
    w = params["bilinear_weight"]
    aligned = jnp.einsum("qax,xy,qby->qba", h1, w, h2, precision=hp)
    return jnp.where(pointer_mask != 0, -jnp.inf, aligned)


def init_params(key, input_size, hidden_size, bart_layers, deeper=False):
    """Deterministic synthetic parameter init (module __init__ shapes).

    Linear weights are stored as [in, out] (PyTorch weight transposed) so the
    kernel does x @ W directly; numerically equivalent for synthetic weights.
    """
    keys = jax.random.split(key, 16)
    ki = iter(range(16))

    def linear(kin, kb, fan_in, fan_out):
        w = jax.random.normal(kin, (fan_in, fan_out), jnp.float32) * 0.05
        b = jax.random.normal(kb, (1, fan_out), jnp.float32) * 0.05
        return (w, b)

    if deeper:
        mid = (input_size + hidden_size) // 2
        src = [linear(keys[next(ki)], keys[next(ki)], input_size, mid),
               linear(keys[next(ki)], keys[next(ki)], mid, hidden_size)]
        tgt = [linear(keys[next(ki)], keys[next(ki)], input_size, mid),
               linear(keys[next(ki)], keys[next(ki)], mid, hidden_size)]
    else:
        src = [linear(keys[next(ki)], keys[next(ki)], input_size, hidden_size)]
        tgt = [linear(keys[next(ki)], keys[next(ki)], input_size, hidden_size)]

    # bilinear_weight is torch.zeros in __init__; use a nonzero deterministic
    # init here so the kernel test is meaningful.
    w_bil = jax.random.normal(keys[next(ki)], (hidden_size, hidden_size),
                              jnp.float32) * 0.05
    scalars = jax.random.normal(keys[next(ki)], (bart_layers,), jnp.float32) * 0.1
    gamma = jnp.float32(1.0)

    return {
        "src_proj": src,
        "tgt_proj": tgt,
        "bilinear_weight": w_bil,
        "scalar_mix_scalars": scalars,
        "scalar_mix_gamma": gamma,
    }


if __name__ == "__main__":
    # TODO(synk): generation_context / update_cache / _reorder_cache are host-side
    # stateful caching for incremental decoding; only the standard
    # (is_generating=False) forward path is implemented here.
    BART_LAYERS = 3
    D, H = 32, 32
    key = jax.random.PRNGKey(0)

    configs = [
        # (Q, S, deeper, b_tile, compact_mask)
        (2, 8,  False, None, True),    # single tile, compact [Q,1,S] mask
        (2, 8,  True,  None, False),   # deeper projections, full [Q,S,S] mask
        (2, 64, False, 32,   True),    # multi-tile 'b' axis + scratch reuse
        (2, 64, True,  32,   False),   # multi-tile + deeper + streamed mask
    ]

    for (Q, S, deeper, b_tile, compact) in configs:
        k_dec, k_mask, k_par = jax.random.split(
            jax.random.fold_in(key, 1000 * S + 10 * int(deeper) + int(compact)), 3)

        # decoder_hidden_states[-bart_layers:] stacked as [L, Q, S, D].
        dec_h_stack = jax.random.normal(k_dec, (BART_LAYERS, Q, S, D), jnp.float32)
        if compact:
            # pre-expand mask [Q, 1, S] (what torch expands over 'b'); nonzero = masked.
            pointer_mask = (jax.random.uniform(k_mask, (Q, 1, S)) < 0.2).astype(jnp.int32)
        else:
            # already expanded mask [Q, S, S].
            pointer_mask = (jax.random.uniform(k_mask, (Q, S, S)) < 0.2).astype(jnp.int32)

        params = init_params(k_par, D, H, BART_LAYERS, deeper=deeper)

        out = bilinear_aligner_forward(dec_h_stack, pointer_mask, params,
                                       deeper=deeper, b_tile=b_tile)
        out = jax.block_until_ready(out)

        ref = reference_forward(dec_h_stack, pointer_mask, params, deeper=deeper)
        assert out.shape == (Q, S, S)
        # bf16 operands + bf16 output stream vs f32 reference -> loosened tolerance.
        ok = bool(jnp.allclose(out.astype(jnp.float32), ref, atol=4e-3, rtol=5e-2))
        assert ok, f"mismatch vs JAX reference (S={S}, deeper={deeper}, compact={compact})"

    print("KERNEL_OK")
</pallas_src>

<mosaic_0001>
module attributes {stable_mosaic.version = 11 : i64} {
  func.func @kernel(%arg0: i32, %arg1: i32, %arg2: memref<1x128x32xbf16, #tpu.memory_space<vmem>>, %arg3: memref<32x256xbf16, #tpu.memory_space<vmem>>, %arg4: memref<1x256xf32, #tpu.memory_space<vmem>>, %arg5: memref<128x128xbf16, #tpu.memory_space<vmem>>, %arg6: memref<1x1x128xi32, #tpu.memory_space<vmem>>, %arg7: memref<1x128x128xbf16, #tpu.memory_space<vmem>>, %arg8: memref<128x128xbf16, #tpu.memory_space<vmem>>, %arg9: memref<128x128xbf16, #tpu.memory_space<vmem>>) attributes {dimension_semantics = [#tpu.dimension_semantics<parallel>, #tpu.dimension_semantics<arbitrary>], iteration_bounds = array<i64: 2, 1>, scalar_prefetch = 0 : i64, scratch_operands = 2 : i64, tpu.core_type = #tpu.core_type<tc>, window_params = [{transform_indices = @transform_0, window_bounds = array<i64: 1, 128, 32>}, {pipeline_mode = #tpu.pipeline_mode<synchronous>, transform_indices = @transform_1, window_bounds = array<i64: 32, 256>}, {pipeline_mode = #tpu.pipeline_mode<synchronous>, transform_indices = @transform_2, window_bounds = array<i64: 1, 256>}, {pipeline_mode = #tpu.pipeline_mode<synchronous>, transform_indices = @transform_3, window_bounds = array<i64: 128, 128>}, {transform_indices = @transform_4, window_bounds = array<i64: 1, 1, 128>}, {transform_indices = @transform_5, window_bounds = array<i64: 1, 128, 128>}]} {
    %c0_i32 = arith.constant 0 : i32
    %0 = arith.cmpi eq, %arg1, %c0_i32 : i32
    %1 = arith.extui %0 : i1 to i32
    %c0_i32_0 = arith.constant 0 : i32
    %2 = arith.cmpi ne, %1, %c0_i32_0 : i32
    scf.if %2 {
      %c0_12 = arith.constant 0 : index
      %c0_13 = arith.constant 0 : index
      %c0_14 = arith.constant 0 : index
      %18 = vector.load %arg2[%c0_12, %c0_13, %c0_14] : memref<1x128x32xbf16, #tpu.memory_space<vmem>>, vector<1x128x32xbf16>
      %19 = vector.shape_cast %18 : vector<1x128x32xbf16> to vector<128x32xbf16>
      %c0_15 = arith.constant 0 : index
      %c0_16 = arith.constant 0 : index
      %20 = vector.load %arg3[%c0_15, %c0_16] : memref<32x256xbf16, #tpu.memory_space<vmem>>, vector<32x256xbf16>
      %cst_17 = arith.constant dense<0.000000e+00> : vector<128x256xf32>
      %21 = tpu.matmul %19, %20, %cst_17 {dimension_numbers = #tpu.dot_dimension_numbers<[1], [0], [0], [1], [0, 0, 1, 1], [], []>} : vector<128x32xbf16>, vector<32x256xbf16>, vector<128x256xf32> -> vector<128x256xf32>
      %c0_18 = arith.constant 0 : index
      %c0_19 = arith.constant 0 : index
      %22 = vector.load %arg4[%c0_18, %c0_19] : memref<1x256xf32, #tpu.memory_space<vmem>>, vector<1x256xf32>
      %23 = vector.broadcast %22 : vector<1x256xf32> to vector<128x256xf32>
      %24 = arith.addf %21, %23 : vector<128x256xf32>
      %cst_20 = arith.constant 0.000000e+00 : f32
      %25 = vector.broadcast %cst_20 : f32 to vector<128x256xf32>
      %26 = arith.cmpf ogt, %24, %25 : vector<128x256xf32>
      %cst_21 = arith.constant 0.00999999977 : f32
      %27 = vector.broadcast %cst_21 : f32 to vector<128x256xf32>
      %28 = arith.mulf %27, %24 : vector<128x256xf32>
      %29 = arith.select %26, %24, %28 : vector<128x256xi1>, vector<128x256xf32>
      %30 = vector.extract_strided_slice %29 {offsets = [0, 0], sizes = [128, 128], strides = [1, 1]} : vector<128x256xf32> to vector<128x128xf32>
      %31 = vector.extract_strided_slice %29 {offsets = [0, 128], sizes = [128, 128], strides = [1, 1]} : vector<128x256xf32> to vector<128x128xf32>
      %c0_22 = arith.constant 0 : index
      %c0_23 = arith.constant 0 : index
      %32 = vector.load %arg5[%c0_22, %c0_23] : memref<128x128xbf16, #tpu.memory_space<vmem>>, vector<128x128xbf16>
      %33 = arith.truncf %30 : vector<128x128xf32> to vector<128x128xbf16>
      %cst_24 = arith.constant dense<0.000000e+00> : vector<128x128xf32>
      %34 = tpu.matmul %32, %33, %cst_24 {dimension_numbers = #tpu.dot_dimension_numbers<[1], [1], [0], [0], [0, 0, 1, 0], [], []>} : vector<128x128xbf16>, vector<128x128xbf16>, vector<128x128xf32> -> vector<128x128xf32>
      %35 = arith.truncf %34 : vector<128x128xf32> to vector<128x128xbf16>
      %c0_25 = arith.constant 0 : index
      %c0_26 = arith.constant 0 : index
      %36 = vector.load %arg8[%c0_25, %c0_26] : memref<128x128xbf16, #tpu.memory_space<vmem>>, vector<128x128xbf16>
      tpu.vector_store %arg8[%c0_25, %c0_26], %35 {strides = array<i32>} : memref<128x128xbf16, #tpu.memory_space<vmem>>, vector<128x128xbf16>,
      %37 = arith.truncf %31 : vector<128x128xf32> to vector<128x128xbf16>
      %c0_27 = arith.constant 0 : index
      %c0_28 = arith.constant 0 : index
      %38 = vector.load %arg9[%c0_27, %c0_28] : memref<128x128xbf16, #tpu.memory_space<vmem>>, vector<128x128xbf16>
      tpu.vector_store %arg9[%c0_27, %c0_28], %37 {strides = array<i32>} : memref<128x128xbf16, #tpu.memory_space<vmem>>, vector<128x128xbf16>,
    } else {
    }
    %c0 = arith.constant 0 : index
    %c0_1 = arith.constant 0 : index
    %3 = vector.load %arg9[%c0, %c0_1] : memref<128x128xbf16, #tpu.memory_space<vmem>>, vector<128x128xbf16>
    %c0_2 = arith.constant 0 : index
    %c0_3 = arith.constant 0 : index
    %4 = vector.load %arg8[%c0_2, %c0_3] : memref<128x128xbf16, #tpu.memory_space<vmem>>, vector<128x128xbf16>
    %cst = arith.constant dense<0.000000e+00> : vector<128x128xf32>
    %5 = tpu.matmul %3, %4, %cst {dimension_numbers = #tpu.dot_dimension_numbers<[1], [0], [0], [1], [0, 0, 1, 1], [], []>} : vector<128x128xbf16>, vector<128x128xbf16>, vector<128x128xf32> -> vector<128x128xf32>
    %c0_4 = arith.constant 0 : index
    %c0_5 = arith.constant 0 : index
    %c0_6 = arith.constant 0 : index
    %6 = vector.load %arg6[%c0_4, %c0_5, %c0_6] : memref<1x1x128xi32, #tpu.memory_space<vmem>>, vector<1x1x128xi32>
    %7 = vector.shape_cast %6 : vector<1x1x128xi32> to vector<1x128xi32>
    %c0_i32_7 = arith.constant 0 : i32
    %8 = vector.broadcast %c0_i32_7 : i32 to vector<1x128xi32>
    %9 = arith.cmpi ne, %7, %8 : vector<1x128xi32>
    %cst_8 = arith.constant 0xFF800000 : f32
    %10 = vector.shape_cast %9 : vector<1x128xi1> to vector<1x128xi1>
    %11 = vector.broadcast %10 : vector<1x128xi1> to vector<128x128xi1>
    %12 = vector.broadcast %cst_8 : f32 to vector<128x128xf32>
    %13 = arith.select %11, %12, %5 : vector<128x128xi1>, vector<128x128xf32>
    %14 = arith.truncf %13 : vector<128x128xf32> to vector<128x128xbf16>
    %c0_9 = arith.constant 0 : index
    %c0_10 = arith.constant 0 : index
    %c0_11 = arith.constant 0 : index
    %15 = vector.load %arg7[%c0_9, %c0_10, %c0_11] : memref<1x128x128xbf16, #tpu.memory_space<vmem>>, vector<1x128x128xbf16>
    %16 = vector.shape_cast %15 : vector<1x128x128xbf16> to vector<128x128xbf16>
    %17 = vector.shape_cast %14 : vector<128x128xbf16> to vector<1x128x128xbf16>
    tpu.vector_store %arg7[%c0_9, %c0_10, %c0_11], %17 {strides = array<i32>} : memref<1x128x128xbf16, #tpu.memory_space<vmem>>, vector<1x128x128xbf16>,
    return
  }
  func.func @transform_0(%arg0: i32, %arg1: i32) -> (i32, i32, i32) {
    %c0_i32 = arith.constant 0 : i32
    %c0_i32_0 = arith.constant 0 : i32
    %c0_i32_1 = arith.constant 0 : i32
    return %arg0, %c0_i32, %c0_i32_0 : i32, i32, i32
  }
  func.func @transform_1(%arg0: i32, %arg1: i32) -> (i32, i32) {
    %c0_i32 = arith.constant 0 : i32
    %c0_i32_0 = arith.constant 0 : i32
    %c0_i32_1 = arith.constant 0 : i32
    return %c0_i32, %c0_i32_0 : i32, i32
  }
  func.func @transform_2(%arg0: i32, %arg1: i32) -> (i32, i32) {
    %c0_i32 = arith.constant 0 : i32
    %c0_i32_0 = arith.constant 0 : i32
    %c0_i32_1 = arith.constant 0 : i32
    return %c0_i32, %c0_i32_0 : i32, i32
  }
  func.func @transform_3(%arg0: i32, %arg1: i32) -> (i32, i32) {
    %c0_i32 = arith.constant 0 : i32
    %c0_i32_0 = arith.constant 0 : i32
    %c0_i32_1 = arith.constant 0 : i32
    return %c0_i32, %c0_i32_0 : i32, i32
  }
  func.func @transform_4(%arg0: i32, %arg1: i32) -> (i32, i32, i32) {
    %c0_i32 = arith.constant 0 : i32
    %c0_i32_0 = arith.constant 0 : i32
    %c0_i32_1 = arith.constant 0 : i32
    return %arg0, %c0_i32, %c0_i32_0 : i32, i32, i32
  }
  func.func @transform_5(%arg0: i32, %arg1: i32) -> (i32, i32, i32) {
    %c0_i32 = arith.constant 0 : i32
    %c0_i32_0 = arith.constant 0 : i32
    return %arg0, %arg1, %c0_i32 : i32, i32, i32
  }
}

</mosaic_0001>

<bundles_post_ra>
// kernel: tpu_custom_call.1
= control target key start
LH: loop header
LB: loop body
LE: loop exit
PB: predicated region body
PF: predicated region fallthrough
CT: control target
= control target key end

     0   :  { %10 = vsyncpa [#allocation5], 0  ;;  %s1930_s0 = inlined_call_operand.vmem [shape: bf16[2,128,32], index: 0, kind: input, shape index: {}]   ;;  %s1931_s1 = inlined_call_operand.vmem [shape: bf16[32,256], index: 1, kind: input, shape index: {}]   ;;  %s1932_s2 = inlined_call_operand.vmem [shape: f32[1,256], index: 2, kind: input, shape index: {}]   ;;  %s1933_s3 = inlined_call_operand.vmem [shape: bf16[128,128], index: 3, kind: input, shape index: {}]   ;;  %s1934_s4 = inlined_call_operand.vmem [shape: s32[2,1,128], index: 4, kind: input, shape index: {}]   ;;  %s1935_s5 = inlined_call_operand.hbm [shape: bf16[2,128,128], index: 5, kind: output, shape index: {}]  }
   0x1   :  { %12 = vsyncpa [#allocation5 + $0x1], 0  ;;  %s1616_s18 = smov 0   ;;  %s1618_s19 = smov 0  }
   0x2   :  { %s1620_s20 = smov 0   ;;  %s1622_s21 = smov 0  }
   0x3   :  { %s1624_s22 = smov 0   ;;  %s1626_s23 = smov 0  }
   0x4 LB: > { %s1077_s24 = sadd.s32 4294967295, %s1581_s23   ;;  %s1078_s25 = sadd.s32 4294967294, %s1581_s23   ;;  %s1581_s23 = sphi %s1626_s23, %s18_s23   ;;  %s1577_s22 = sphi %s1624_s22, %s1944_s22   ;;  %s1573_s21 = sphi %s1622_s21, %s1943_s21   ;;  %s1569_s20 = sphi %s1620_s20, %s1942_s20   ;;  %s1565_s19 = sphi %s1618_s19, %s1941_s19   ;;  %s1561_s18 = sphi %s1616_s18, %s1940_s18  }
   0x5   : > { %s30_s26 = sadd.s32 1, %s1577_s22  ;;  %s154_s27 = sadd.s32 1, %s1569_s20 }
   0x6   : > { %p32_p0 = scmp.ge.s32.totalorder %s30_s26, 2  ;;  %p164_p1 = scmp.ne.s32.totalorder %s1569_s20, %s1565_s19 }
   0x7   : > { %p165_p2 = scmp.eq.s32.totalorder %s1077_s24, 1  ;;  %p170_p3 = scmp.ne.s32.totalorder %s1565_s19, %s1561_s18 }
   0x8   : > { %s1946_s26 = smov (%p32_p0, %s30_s26), 0  ;;  %p171_p5 = scmp.eq.s32.totalorder %s1078_s25, 1 }
   0x9   : > { %p1656_p4 = por %p165_p2, %p164_p1  ;;  %s149_s29 = ssub.s32 %s1577_s22, %s1946_s26 }
   0xa   : > { %p1081_p6 = scmp.ge.s32.totalorder %s1581_s23, 1  ;;  %p152_p7 = scmp.eq.s32.totalorder %s149_s29, 0 }
   0xb   : > { %p1663_p8 = por %p171_p5, %p170_p3  ;;  %p212_p9 = scmp.lt.s32.totalorder %s1581_s23, 3 }
   0xc   : > { %s1669_s6 = scalar_select %p152_p7, %s1569_s20, %s154_s27  }
   0xd   : > { %p213_p10 = pnand %p1081_p6, %p212_p9 }
   0xe   : > { %p243_p11 = scmp.lt.s32.totalorder (!%p213_p10), %s1573_s21, 1  ;;  %s240_s29 = sand.u32 (!%p213_p10), 1, %s1565_s19  }
   0xf   : > { %216 = sbr.rel (%p213_p10) target bundleno = 867 (0x363), region = 40  ;;  %s1082_s7 = sshll.u32 (!%p213_p10), %s240_s29, 6 }
  0x10   : > { %s1287_s8 = sshll.u32 (!%p213_p10), %s1573_s21, 6 }
  0x11   : > { %s991_s11 = scalar_lea.hbm (!%p213_p10), %s1935_s5, %s1287_s8 }
  0x12   : > { %s994_s13 = sshll.u32 (!%p213_p10), %s991_s11, 4  ;;  %s995_s13 = int_to_ptr.hbm [resolvable:$true] %s994_s13 }
  0x13   : > { %s1517_s14 = sshra.s32 (!%p213_p10), %s995_s13, 4  ;;  %s1518_s14 = int_to_ptr.hbm [resolvable:$true] %s1517_s14 }
  0x14   : > { %v1127_v0 = vld [vmem:[%s1931_s1 + $0x10] sm:$0xf]  ;;  %v1262_v1 = vld [vmem:[%s1931_s1 + $0x14] sm:$0xf0]  ;;  %v1119_v2 = vld [vmem:[%s1931_s1] sm:$0xf]  ;;  %p1524_p1 = scmp.lt.s32.totalorder %s1518_s14, %s1935_s5 }
  0x15   : > { %v1128_v3 = vor.u32 %v1262_v1, %v1127_v0  ;;  %v1260_v4 = vld [vmem:[%s1931_s1 + $0x4] sm:$0xf0]  ;;  %s1685_s15 = scalar_select %p243_p11, %s1573_s21, 1  ;;  %vm343_vm0 = vcmask 261120   ;;  %v1726_v14 = vld [vmem:[%s1932_s2] sm:$0x3] }
  0x16   : > { %v1120_v5 = vor.u32 %v1260_v4, %v1119_v2  ;;  %v1729_v16 = vperm.slane %v1726_v14, 0  ;;  %v1261_v63 = vld [vmem:[%s1931_s1 + $0x14] sm:$0xf]  ;;  %v1129_v0 = vld [vmem:[%s1931_s1 + $0x18] sm:$0xf0]  ;;  %s978_s21 = scalar_lea.sflag [#allocation5], %s240_s29 }
  0x17   : > { %374 = vmatpush.bf16.msra.mxu0 %v1128_v3  ;;  %s1250_s16 = sshll.u32 %s1685_s15, 6  ;;  %v1132_v1 = vor.u32 %v1261_v63, %v1129_v0  ;;  %v1259_v2 = vld [vmem:[%s1931_s1 + $0x4] sm:$0xf]  ;;  %v1121_v3 = vld [vmem:[%s1931_s1 + $0x8] sm:$0xf0]  ;;  %s250_s27 = scalar_lea.vmem %s1934_s4, %s1685_s15 }
  0x18   : > { %s247_s25 = scalar_lea.vmem %s1930_s0, %s1250_s16  ;;  %v1124_v4 = vor.u32 %v1259_v2, %v1121_v3  ;;  %s1853_s15 = scalar_lea.vmem [#allocation4], %s1082_s7 }
  0x19   : > { %v1691_v6 = vld [vmem:[%s247_s25] sm:$0xff]  ;;  %v1695_v7 = vld [vmem:[%s247_s25 + $0x8] sm:$0xff]  ;;  %v1699_v8 = vld [vmem:[%s247_s25 + $0x10] sm:$0xff]  ;;  %423 = vmatpush.bf16.msra.mxu1 %v1132_v1  ;;  %s992_s12 = sshll.u32 %s1853_s15, 4  ;;  %s1519_s16 = scalar_lea.hbm %s1518_s14, 64  ;;  %s993_s12 = int_to_ptr.vmem [resolvable:$true] %s992_s12 }
  0x1a   : > { %v1703_v9 = vld [vmem:[%s247_s25 + $0x18] sm:$0xff]  ;;  %v1707_v10 = vld [vmem:[%s247_s25 + $0x20] sm:$0xff]  ;;  %v1711_v11 = vld [vmem:[%s247_s25 + $0x28] sm:$0xff]  ;;  %p1520_p12 = scmp.ne.s32.totalorder %s1518_s14, %s1519_s16 }
  0x1b   : > { %375 = vmatpush.bf16.msra.mxu0 %v1120_v5  ;;  %v1715_v12 = vld [vmem:[%s247_s25 + $0x30] sm:$0xff]  ;;  %v1719_v13 = vld [vmem:[%s247_s25 + $0x38] sm:$0xff]  ;;  %s1523_s25 = scalar_lea.hbm %s1935_s5, 128 }
  0x1c   : > { %p1521_p13 = pnand %p1520_p12, %p1656_p4  ;;  %p1525_p2 = scmp.lt.s32.totalorder %s1523_s25, %s1519_s16 }
  0x1d   : > { %424 = vmatpush.bf16.msra.mxu1 %v1124_v4 }
  0x1e   : > { %1133 = vmatmul.msk.bf16.vlgmr.msra.gmra.mxu0 %vm343_vm0, %v1691_v6  ;;  %p1522_p0 = pneg %p1521_p13  ;;  %p1526_p3 = por %p1525_p2, %p1524_p1 }
  0x20   : > { %1141 = vmatmul.msk.bf16.vlgmr.msra.gmra.mxu1 %vm343_vm0, %v1691_v6  ;;  %p1527_p5 = pnand %p1526_p3, %p1522_p0 }
  0x2e   : > { %1134 = vmatmul.msk.bf16.gmra.mxu0 %vm343_vm0, %v1695_v7 }
  0x30   : > { %1142 = vmatmul.msk.bf16.gmra.mxu1 %vm343_vm0, %v1695_v7 }
  0x3e   : > { %1135 = vmatmul.msk.bf16.gmra.mxu0 %vm343_vm0, %v1699_v8 }
  0x40   : > { %1143 = vmatmul.msk.bf16.gmra.mxu1 %vm343_vm0, %v1699_v8  ;;  %v1265_v8 = vld [vmem:[%s1933_s3 + $0x10] sm:$0xff] }
  0x4e   : > { %1136 = vmatmul.msk.bf16.gmra.mxu0 %vm343_vm0, %v1703_v9 }
  0x50   : > { %1144 = vmatmul.msk.bf16.gmra.mxu1 %vm343_vm0, %v1703_v9  ;;  %v1266_v9 = vld [vmem:[%s1933_s3 + $0x18] sm:$0xff] }
  0x5e   : > { %1137 = vmatmul.msk.bf16.gmra.mxu0 %vm343_vm0, %v1707_v10 }
  0x60   : > { %1145 = vmatmul.msk.bf16.gmra.mxu1 %vm343_vm0, %v1707_v10  ;;  %v1267_v10 = vld [vmem:[%s1933_s3 + $0x20] sm:$0xff] }
  0x6e   : > { %1138 = vmatmul.msk.bf16.gmra.mxu0 %vm343_vm0, %v1711_v11 }
  0x70   : > { %1146 = vmatmul.msk.bf16.gmra.mxu1 %vm343_vm0, %v1711_v11  ;;  %v1268_v11 = vld [vmem:[%s1933_s3 + $0x28] sm:$0xff] }
  0x7e   : > { %1139 = vmatmul.msk.bf16.gmra.mxu0 %vm343_vm0, %v1715_v12 }
  0x80   : > { %1147 = vmatmul.msk.bf16.gmra.mxu1 %vm343_vm0, %v1715_v12  ;;  %v1808_v12 = vperm.slane %v1726_v14, 1 }
  0x8e   : > { %1140 = vmatmul.msk.bf16.gmra.mxu0 %vm343_vm0, %v1719_v13 }
  0x90   : > { %1148 = vmatmul.msk.bf16.gmra.mxu1 %vm343_vm0, %v1719_v13  ;;  %v1263_v13 = vld [vmem:[%s1933_s3] sm:$0xff] }
  0x9b   : > { %v377_v15 = vpop.f32.mrf.mxu0 }
  0x9c   : > { %v378_v17 = vadd.f32 %v377_v15, %v1729_v16 }
  0x9e   : > { %v498_v19 = vmul.f32 0.01, %v378_v17  ;;  %vm466_vm1 = vcmp.gt.f32.partialorder %v378_v17, 0.0 }
  0xa0   : > { %v530_v22 = vsel %vm466_vm1, %v378_v17, %v498_v19 }
  0xa3   : > { %v379_v18 = vpop.f32.mrf.mxu0 }
  0xa4   : > { %v380_v20 = vadd.f32 %v379_v18, %v1729_v16 }
  0xa6   : > { %vm468_vm2 = vcmp.gt.f32.partialorder %v380_v20, 0.0  ;;  %v500_v21 = vmul.f32 0.01, %v380_v20 }
  0xa8   : > { %v532_v23 = vsel %vm468_vm2, %v380_v20, %v500_v21 }
  0xa9   : > { %v1733_v24 = vpack.c.bf16 %v532_v23, %v530_v22 }
  0xab   : > { %v382_v25 = vpop.f32.mrf.mxu0 }
  0xac   : > { %v383_v26 = vadd.f32 %v382_v25, %v1729_v16 }
  0xae   : > { %v502_v28 = vmul.f32 0.01, %v383_v26  ;;  %vm470_vm3 = vcmp.gt.f32.partialorder %v383_v26, 0.0 }
  0xb0   : > { %v534_v31 = vsel %vm470_vm3, %v383_v26, %v502_v28 }
  0xb3   : > { %v384_v27 = vpop.f32.mrf.mxu0 }
  0xb4   : > { %v385_v29 = vadd.f32 %v384_v27, %v1729_v16 }
  0xb6   : > { %vm472_vm4 = vcmp.gt.f32.partialorder %v385_v29, 0.0  ;;  %v504_v30 = vmul.f32 0.01, %v385_v29 }
  0xb8   : > { %v536_v32 = vsel %vm472_vm4, %v385_v29, %v504_v30 }
  0xb9   : > { %v1737_v33 = vpack.c.bf16 %v536_v32, %v534_v31 }
  0xbb   : > { %v387_v34 = vpop.f32.mrf.mxu0 }
  0xbc   : > { %v388_v35 = vadd.f32 %v387_v34, %v1729_v16 }
  0xbe   : > { %v506_v37 = vmul.f32 0.01, %v388_v35  ;;  %vm474_vm5 = vcmp.gt.f32.partialorder %v388_v35, 0.0 }
  0xc0   : > { %v538_v40 = vsel %vm474_vm5, %v388_v35, %v506_v37 }
  0xc3   : > { %v389_v36 = vpop.f32.mrf.mxu0 }
  0xc4   : > { %v390_v38 = vadd.f32 %v389_v36, %v1729_v16 }
  0xc6   : > { %vm476_vm6 = vcmp.gt.f32.partialorder %v390_v38, 0.0  ;;  %v508_v39 = vmul.f32 0.01, %v390_v38 }
  0xc8   : > { %v540_v41 = vsel %vm476_vm6, %v390_v38, %v508_v39 }
  0xc9   : > { %v1741_v42 = vpack.c.bf16 %v540_v41, %v538_v40 }
  0xcb   : > { %v392_v43 = vpop.f32.mrf.mxu0 }
  0xcc   : > { %v393_v44 = vadd.f32 %v392_v43, %v1729_v16 }
  0xce   : > { %v510_v46 = vmul.f32 0.01, %v393_v44  ;;  %vm478_vm7 = vcmp.gt.f32.partialorder %v393_v44, 0.0 }
  0xd0   : > { %v542_v49 = vsel %vm478_vm7, %v393_v44, %v510_v46  ;;  %v1269_v44 = vld [vmem:[%s1933_s3 + $0x30] sm:$0xff] }
  0xd3   : > { %v394_v45 = vpop.f32.mrf.mxu0 }
  0xd4   : > { %v395_v47 = vadd.f32 %v394_v45, %v1729_v16 }
  0xd6   : > { %vm480_vm8 = vcmp.gt.f32.partialorder %v395_v47, 0.0  ;;  %v512_v48 = vmul.f32 0.01, %v395_v47 }
  0xd8   : > { %v544_v50 = vsel %vm480_vm8, %v395_v47, %v512_v48 }
  0xd9   : > { %v1745_v51 = vpack.c.bf16 %v544_v50, %v542_v49 }
  0xdb   : > { %v397_v52 = vpop.f32.mrf.mxu0 }
  0xdc   : > { %v398_v53 = vadd.f32 %v397_v52, %v1729_v16 }
  0xde   : > { %v514_v55 = vmul.f32 0.01, %v398_v53  ;;  %vm482_vm9 = vcmp.gt.f32.partialorder %v398_v53, 0.0 }
  0xe0   : > { %v546_v58 = vsel %vm482_vm9, %v398_v53, %v514_v55 }
  0xe3   : > { %v399_v54 = vpop.f32.mrf.mxu0 }
  0xe4   : > { %v400_v56 = vadd.f32 %v399_v54, %v1729_v16  ;;  %v1270_v54 = vld [vmem:[%s1933_s3 + $0x38] sm:$0xff] }
  0xe6   : > { %vm484_vm10 = vcmp.gt.f32.partialorder %v400_v56, 0.0  ;;  %v516_v57 = vmul.f32 0.01, %v400_v56 }
  0xe8   : > { %v548_v59 = vsel %vm484_vm10, %v400_v56, %v516_v57 }
  0xe9   : > { %v582_v60 = vpack.c.bf16 %v548_v59, %v546_v58 }
  0xeb   : > { %v402_v61 = vpop.f32.mrf.mxu0 }
  0xec   : > { %v403_v31 = vadd.f32 %v402_v61, %v1729_v16 }
  0xee   : > { %v518_v36 = vmul.f32 0.01, %v403_v31  ;;  %vm486_vm1 = vcmp.gt.f32.partialorder %v403_v31, 0.0 }
  0xf0   : > { %v550_v38 = vsel %vm486_vm1, %v403_v31, %v518_v36 }
  0xf3   : > { %v404_v62 = vpop.f32.mrf.mxu0 }
  0xf4   : > { %v405_v29 = vadd.f32 %v404_v62, %v1729_v16 }
  0xf6   : > { %v520_v35 = vmul.f32 0.01, %v405_v29  ;;  %vm488_vm15 = vcmp.gt.f32.partialorder %v405_v29, 0.0 }
  0xf8   : > { %v552_v37 = vsel %vm488_vm15, %v405_v29, %v520_v35 }
  0xf9   : > { %v583_v39 = vpack.c.bf16 %v552_v37, %v550_v38 }
  0xfb   : > { %v407_v5 = vpop.f32.mrf.mxu0 }
  0xfc   : > { %v408_v25 = vadd.f32 %v407_v5, %v1729_v16 }
  0xfe   : > { %v522_v7 = vmul.f32 0.01, %v408_v25  ;;  %vm490_vm14 = vcmp.gt.f32.partialorder %v408_v25, 0.0 }
 0x100   : > { %v554_v32 = vsel %vm490_vm14, %v408_v25, %v522_v7 }
 0x103   : > { %v409_v15 = vpop.f32.mrf.mxu0 }
 0x104   : > { %v410_v22 = vadd.f32 %v409_v15, %v1729_v16 }
 0x106   : > { %v524_v28 = vmul.f32 0.01, %v410_v22  ;;  %vm492_vm13 = vcmp.gt.f32.partialorder %v410_v22, 0.0 }
 0x108   : > { %v556_v30 = vsel %vm492_vm13, %v410_v22, %v524_v28 }
 0x109   : > { %v584_v34 = vpack.c.bf16 %v556_v30, %v554_v32 }
 0x10b   : > { %v412_v17 = vpop.f32.mrf.mxu0 }
 0x10c   : > { %v413_v18 = vadd.f32 %v412_v17, %v1729_v16 }
 0x10e   : > { %v526_v20 = vmul.f32 0.01, %v413_v18  ;;  %vm494_vm11 = vcmp.gt.f32.partialorder %v413_v18, 0.0 }
 0x110   : > { %v558_v26 = vsel %vm494_vm11, %v413_v18, %v526_v20 }
 0x113   : > { %v414_v19 = vpop.f32.mrf.mxu0 }
 0x114   : > { %v415_v21 = vadd.f32 %v414_v19, %v1729_v16  ;;  %v426_v16 = vpop.f32.mrf.mxu1 }
 0x116   : > { %vm496_vm12 = vcmp.gt.f32.partialorder %v415_v21, 0.0  ;;  %v528_v23 = vmul.f32 0.01, %v415_v21 }
 0x118   : > { %v560_v6 = vsel %vm496_vm12, %v415_v21, %v528_v23 }
 0x119   : > { %v585_v27 = vpack.c.bf16 %v560_v6, %v558_v26 }
 0x11b   : > { %634 = vmatpush.bf16.xpose.msrb.mxu0 %v585_v27  ;;  %1429 = vmatpush.bf16.xpose.msrb.mxu1 %v585_v27 }
 0x11c   : > { %1430 = vmatpush.bf16.xpose.msra.mxu2 %v585_v27  ;;  %v428_v41 = vpop.f32.mrf.mxu1 }
 0x123   : > { %635 = vmatpush.bf16.xpose.msrb.mxu0 %v584_v34  ;;  %1431 = vmatpush.bf16.xpose.msrb.mxu1 %v584_v34 }
 0x124   : > { %1432 = vmatpush.bf16.xpose.msra.mxu2 %v584_v34  ;;  %v431_v47 = vpop.f32.mrf.mxu1 }
 0x125   : > { %v432_v48 = vadd.f32 %v431_v47, %v1808_v12 }
 0x127   : > { %v503_v49 = vmul.f32 0.01, %v432_v48  ;;  %vm471_vm3 = vcmp.gt.f32.partialorder %v432_v48, 0.0 }
 0x129   : > { %v535_v52 = vsel %vm471_vm3, %v432_v48, %v503_v49 }
 0x12b   : > { %636 = vmatpush.bf16.xpose.msrb.mxu0 %v583_v39  ;;  %1433 = vmatpush.bf16.xpose.msrb.mxu1 %v583_v39 }
 0x12c   : > { %1434 = vmatpush.bf16.xpose.msra.mxu2 %v583_v39  ;;  %v433_v50 = vpop.f32.mrf.mxu1 }
 0x133   : > { %637 = vmatpush.bf16.xpose.msrb.mxu0 %v582_v60  ;;  %1435 = vmatpush.bf16.xpose.msrb.mxu1 %v582_v60 }
 0x134   : > { %1436 = vmatpush.bf16.xpose.msra.mxu2 %v582_v60  ;;  %v436_v57 = vpop.f32.mrf.mxu1 }
 0x135   : > { %v437_v58 = vadd.f32 %v436_v57, %v1808_v12 }
 0x137   : > { %v507_v59 = vmul.f32 0.01, %v437_v58  ;;  %vm475_vm5 = vcmp.gt.f32.partialorder %v437_v58, 0.0 }
 0x139   : > { %v539_v62 = vsel %vm475_vm5, %v437_v58, %v507_v59 }
 0x13b   : > { %638 = vmatpush.bf16.xpose.msrb.mxu0 %v1745_v51  ;;  %1437 = vmatpush.bf16.xpose.msrb.mxu1 %v1745_v51 }
 0x13c   : > { %1438 = vmatpush.bf16.xpose.msra.mxu2 %v1745_v51  ;;  %v434_v51 = vadd.f32 %v433_v50, %v1808_v12  ;;  %v438_v60 = vpop.f32.mrf.mxu1 }
 0x13d   : > { %v439_v61 = vadd.f32 %v438_v60, %v1808_v12 }
 0x13e   : > { %vm473_vm4 = vcmp.gt.f32.partialorder %v434_v51, 0.0  ;;  %v505_v53 = vmul.f32 0.01, %v434_v51 }
 0x13f   : > { %vm477_vm6 = vcmp.gt.f32.partialorder %v439_v61, 0.0  ;;  %v509_v63 = vmul.f32 0.01, %v439_v61 }
 0x140   : > { %v537_v55 = vsel %vm473_vm4, %v434_v51, %v505_v53 }
 0x141   : > { %v1336_v56 = vpack.c.bf16 %v537_v55, %v535_v52  ;;  %v541_v0 = vsel %vm477_vm6, %v439_v61, %v509_v63 }
 0x142   : > { %v1341_v1 = vpack.c.bf16 %v541_v0, %v539_v62 }
 0x143   : > { %639 = vmatpush.bf16.xpose.msrb.mxu0 %v1741_v42  ;;  %1439 = vmatpush.bf16.xpose.msrb.mxu1 %v1741_v42  ;;  %1415 = vst [vmem:[#allocation3 + $0x18] sm:$0xff] %v1336_v56  }
 0x144   : > { %1440 = vmatpush.bf16.xpose.msra.mxu2 %v1741_v42  ;;  %v429_v42 = vadd.f32 %v428_v41, %v1808_v12  ;;  %1416 = vst [vmem:[#allocation3 + $0x10] sm:$0xff] %v1341_v1   ;;  %v441_v2 = vpop.f32.mrf.mxu1 }
 0x145   : > { %v442_v3 = vadd.f32 %v441_v2, %v1808_v12 }
 0x146   : > { %vm469_vm2 = vcmp.gt.f32.partialorder %v429_v42, 0.0  ;;  %v501_v43 = vmul.f32 0.01, %v429_v42 }
 0x147   : > { %v511_v4 = vmul.f32 0.01, %v442_v3  ;;  %vm479_vm7 = vcmp.gt.f32.partialorder %v442_v3, 0.0 }
 0x148   : > { %v533_v45 = vsel %vm469_vm2, %v429_v42, %v501_v43 }
 0x149   : > { %v543_v17 = vsel %vm479_vm7, %v442_v3, %v511_v4 }
 0x14b   : > { %640 = vmatpush.bf16.xpose.msrb.mxu0 %v1737_v33  ;;  %1441 = vmatpush.bf16.xpose.msrb.mxu1 %v1737_v33 }
 0x14c   : > { %1442 = vmatpush.bf16.xpose.msra.mxu2 %v1737_v33  ;;  %v427_v33 = vadd.f32 %v426_v16, %v1808_v12  ;;  %v443_v5 = vpop.f32.mrf.mxu1 }
 0x14d   : > { %v444_v15 = vadd.f32 %v443_v5, %v1808_v12 }
 0x14e   : > { %v499_v40 = vmul.f32 0.01, %v427_v33  ;;  %vm467_vm0 = vcmp.gt.f32.partialorder %v427_v33, 0.0 }
 0x14f   : > { %vm481_vm8 = vcmp.gt.f32.partialorder %v444_v15, 0.0  ;;  %v513_v18 = vmul.f32 0.01, %v444_v15 }
 0x150   : > { %v531_v14 = vsel %vm467_vm0, %v427_v33, %v499_v40 }
 0x151   : > { %v1331_v46 = vpack.c.bf16 %v533_v45, %v531_v14  ;;  %v545_v19 = vsel %vm481_vm8, %v444_v15, %v513_v18 }
 0x152   : > { %v1346_v20 = vpack.c.bf16 %v545_v19, %v543_v17 }
 0x153   : > { %641 = vmatpush.bf16.xpose.msrb.mxu0 %v1733_v24  ;;  %1443 = vmatpush.bf16.xpose.msrb.mxu1 %v1733_v24  ;;  %1332 = vst [vmem:[#allocation3] sm:$0xff] %v1331_v46  }
 0x154   : > { %1444 = vmatpush.bf16.xpose.msra.mxu2 %v1733_v24  ;;  %v1264_v24 = vld [vmem:[%s1933_s3 + $0x8] sm:$0xff]  ;;  %1417 = vst [vmem:[#allocation3 + $0x20] sm:$0xff] %v1346_v20   ;;  %v446_v21 = vpop.f32.mrf.mxu1 }
 0x155   : > { %v447_v22 = vadd.f32 %v446_v21, %v1808_v12 }
 0x157   : > { %v515_v25 = vmul.f32 0.01, %v447_v22  ;;  %vm483_vm9 = vcmp.gt.f32.partialorder %v447_v22, 0.0 }
 0x159   : > { %v547_v27 = vsel %vm483_vm9, %v447_v22, %v515_v25 }
 0x15a   : > { %647 = vmatmul.bf16.vlgmr.msrb.gmra.mxu1 %v1264_v24  ;;  %642 = vmatmul.bf16.vlgmr.msrb.gmra.mxu0 %v1263_v13 }
 0x15b   : > { %652 = vmatmul.bf16.vlgmr.msra.gmra.mxu2 %v1265_v8 }
 0x15c   : > { %v448_v26 = vpop.f32.mrf.mxu1 }
 0x15d   : > { %v449_v6 = vadd.f32 %v448_v26, %v1808_v12  ;;  %v1271_v26 = vld [vmem:[#allocation3] sm:$0xff] }
 0x15f   : > { %vm485_vm10 = vcmp.gt.f32.partialorder %v449_v6, 0.0  ;;  %v517_v28 = vmul.f32 0.01, %v449_v6 }
 0x161   : > { %v549_v29 = vsel %vm485_vm10, %v449_v6, %v517_v28  ;;  %v1272_v6 = vld [vmem:[#allocation3 + $0x18] sm:$0xff]  ;;  %v1274_v28 = vld [vmem:[#allocation3 + $0x20] sm:$0xff] }
 0x162   : > { %v1351_v31 = vpack.c.bf16 %v549_v29, %v547_v27  ;;  %v1273_v27 = vld [vmem:[#allocation3 + $0x10] sm:$0xff] }
 0x164   : > { %v451_v32 = vpop.f32.mrf.mxu1  ;;  %1418 = vst [vmem:[#allocation3 + $0x28] sm:$0xff] %v1351_v31  }
 0x165   : > { %v452_v34 = vadd.f32 %v451_v32, %v1808_v12  ;;  %v924_v32 = vld [vmem:[%s250_s27] sm:$0x1] }
 0x166   : > { %vm925_vm0 = vcmp.ne.s32.totalorder %v924_v32, 0 }
 0x167   : > { %v519_v36 = vmul.f32 0.01, %v452_v34  ;;  %vm487_vm11 = vcmp.gt.f32.partialorder %v452_v34, 0.0 }
 0x169   : > { %v551_v39 = vsel %vm487_vm11, %v452_v34, %v519_v36  ;;  %v1583_v34 = vmov 0  }
 0x16b   : > { %657 = vmatmul.bf16.gmra.mxu2 %v1266_v9 }
 0x16c   : > { %v453_v37 = vpop.f32.mrf.mxu1 }
 0x16d   : > { %v454_v38 = vadd.f32 %v453_v37, %v1808_v12 }
 0x16f   : > { %vm489_vm12 = vcmp.gt.f32.partialorder %v454_v38, 0.0  ;;  %v521_v8 = vmul.f32 0.01, %v454_v38 }
 0x174   : > { %v456_v24 = vpop.f32.mrf.mxu1 }
 0x175   : > { %v457_v13 = vadd.f32 %v456_v24, %v1808_v12 }
 0x177   : > { %v523_v40 = vmul.f32 0.01, %v457_v13  ;;  %vm491_vm13 = vcmp.gt.f32.partialorder %v457_v13, 0.0 }
 0x179   : > { %v555_v14 = vsel %vm491_vm13, %v457_v13, %v523_v40 }
 0x17b   : > { %662 = vmatmul.bf16.gmra.mxu2 %v1267_v10  ;;  %v553_v10 = vsel %vm489_vm12, %v454_v38, %v521_v8 }
 0x17c   : > { %v1356_v16 = vpack.c.bf16 %v553_v10, %v551_v39  ;;  %v458_v41 = vpop.f32.mrf.mxu1 }
 0x17d   : > { %v459_v42 = vadd.f32 %v458_v41, %v1808_v12 }
 0x17e   : > { %1419 = vst [vmem:[#allocation3 + $0x8] sm:$0xff] %v1356_v16  }
 0x17f   : > { %vm493_vm14 = vcmp.gt.f32.partialorder %v459_v42, 0.0  ;;  %v525_v43 = vmul.f32 0.01, %v459_v42 }
 0x181   : > { %v557_v45 = vsel %vm493_vm14, %v459_v42, %v525_v43 }
 0x182   : > { %v1361_v47 = vpack.c.bf16 %v557_v45, %v555_v14 }
 0x184   : > { %v461_v48 = vpop.f32.mrf.mxu1  ;;  %1420 = vst [vmem:[#allocation3 + $0x30] sm:$0xff] %v1361_v47  }
 0x185   : > { %v462_v49 = vadd.f32 %v461_v48, %v1808_v12  ;;  %v1276_v29 = vld [vmem:[#allocation3 + $0x8] sm:$0xff] }
 0x187   : > { %v527_v51 = vmul.f32 0.01, %v462_v49  ;;  %vm495_vm15 = vcmp.gt.f32.partialorder %v462_v49, 0.0 }
 0x18b   : > { %667 = vmatmul.bf16.gmra.mxu2 %v1268_v11 }
 0x18c   : > { %v463_v52 = vpop.f32.mrf.mxu1 }
 0x18d   : > { %v464_v53 = vadd.f32 %v463_v52, %v1808_v12 }
 0x18f   : > { %vm497_vm1 = vcmp.gt.f32.partialorder %v464_v53, 0.0  ;;  %v529_v55 = vmul.f32 0.01, %v464_v53 }
 0x191   : > { %v561_v57 = vsel %vm497_vm1, %v464_v53, %v529_v55 }
 0x19b   : > { %672 = vmatmul.bf16.gmra.mxu2 %v1269_v44 }
 0x1ab   : > { %677 = vmatmul.bf16.gmra.mxu2 %v1270_v54  ;;  %v559_v54 = vsel %vm495_vm15, %v462_v49, %v527_v51 }
 0x1ac   : > { %v1366_v59 = vpack.c.bf16 %v561_v57, %v559_v54 }
 0x1ae   : > { %1421 = vst [vmem:[#allocation3 + $0x38] sm:$0xff] %v1366_v59  }
 0x1b5   : > { %v1278_v31 = vld [vmem:[#allocation3 + $0x38] sm:$0xff] }
 0x1d7   : > { %v648_v60 = vpop.f32.mrf.mxu1  ;;  %v643_v61 = vpop.f32.mrf.mxu0 }
 0x1de   : > { %v653_v23 = vpop.f32.mrf.mxu2 }
 0x1df   : > { %v650_v63 = vpop.f32.mrf.mxu1  ;;  %v645_v2 = vpop.f32.mrf.mxu0 }
 0x1e0   : > { %v1296_v0 = vpack.c.bf16 %v650_v63, %v648_v60  ;;  %v1291_v4 = vpack.c.bf16 %v645_v2, %v643_v61 }
 0x1e2   : > { %1408 = vst [vmem:[#allocation2] sm:$0xff] %v1296_v0  }
 0x1e3   : > { %1292 = vst [vmem:[#allocation2 + $0x30] sm:$0xff] %v1291_v4  }
 0x1e6   : > { %v655_v7 = vpop.f32.mrf.mxu2 }
 0x1e7   : > { %v1301_v30 = vpack.c.bf16 %v655_v7, %v653_v23  ;;  %v1275_v7 = vld [vmem:[#allocation3 + $0x28] sm:$0xff] }
 0x1e9   : > { %1409 = vst [vmem:[#allocation2 + $0x18] sm:$0xff] %v1301_v30   ;;  %v1280_v23 = vld [vmem:[#allocation2] sm:$0xff]  ;;  %v1277_v30 = vld [vmem:[#allocation3 + $0x30] sm:$0xff] }
 0x1ea   : > { %v1279_v25 = vld [vmem:[#allocation2 + $0x30] sm:$0xff] }
 0x1ee   : > { %v658_v35 = vpop.f32.mrf.mxu2 }
 0x1f0   : > { %v1281_v22 = vld [vmem:[#allocation2 + $0x18] sm:$0xff] }
 0x1f6   : > { %v660_v9 = vpop.f32.mrf.mxu2 }
 0x1f7   : > { %v1306_v11 = vpack.c.bf16 %v660_v9, %v658_v35  ;;  %v926_v35 = vsel %vm925_vm0, 1, %v1583_v34 }
 0x1f8   : > { %v927_v37 = vperm.slane %v926_v35, 0 }
 0x1f9   : > { %1410 = vst [vmem:[#allocation2 + $0x10] sm:$0xff] %v1306_v11  }
 0x1fa   : > { %vm1843_vm2 = vcmp.eq.s32.totalorder %v927_v37, 1 }
 0x1fe   : > { %v663_v33 = vpop.f32.mrf.mxu2 }
 0x200   : > { %v1282_v21 = vld [vmem:[#allocation2 + $0x10] sm:$0xff] }
 0x206   : > { %v665_v44 = vpop.f32.mrf.mxu2 }
 0x207   : > { %v1311_v46 = vpack.c.bf16 %v665_v44, %v663_v33 }
 0x209   : > { %1411 = vst [vmem:[#allocation2 + $0x8] sm:$0xff] %v1311_v46  }
 0x20e   : > { %v668_v50 = vpop.f32.mrf.mxu2 }
 0x210   : > { %v1283_v20 = vld [vmem:[#allocation2 + $0x8] sm:$0xff] }
 0x216   : > { %v670_v56 = vpop.f32.mrf.mxu2 }
 0x217   : > { %v1316_v58 = vpack.c.bf16 %v670_v56, %v668_v50 }
 0x219   : > { %1412 = vst [vmem:[#allocation2 + $0x20] sm:$0xff] %v1316_v58  }
 0x21e   : > { %v673_v62 = vpop.f32.mrf.mxu2 }
 0x220   : > { %v1284_v19 = vld [vmem:[#allocation2 + $0x20] sm:$0xff] }
 0x226   : > { %v675_v1 = vpop.f32.mrf.mxu2 }
 0x227   : > { %v1321_v3 = vpack.c.bf16 %v675_v1, %v673_v62 }
 0x229   : > { %1413 = vst [vmem:[#allocation2 + $0x28] sm:$0xff] %v1321_v3  }
 0x22e   : > { %v678_v12 = vpop.f32.mrf.mxu2 }
 0x230   : > { %v1285_v18 = vld [vmem:[#allocation2 + $0x28] sm:$0xff] }
 0x236   : > { %v680_v5 = vpop.f32.mrf.mxu2 }
 0x237   : > { %v1326_v15 = vpack.c.bf16 %v680_v5, %v678_v12 }
 0x239   : > { %1414 = vst [vmem:[#allocation2 + $0x38] sm:$0xff] %v1326_v15  }
 0x240   : > { %v1286_v17 = vld [vmem:[#allocation2 + $0x38] sm:$0xff] }
 0x241   : > { %875 = vmatpush.bf16.msra.mxu3 %v1286_v17 }
 0x245   : > { %876 = vmatpush.bf16.msra.mxu3 %v1285_v18 }
 0x249   : > { %877 = vmatpush.bf16.msra.mxu3 %v1284_v19 }
 0x24d   : > { %878 = vmatpush.bf16.msra.mxu3 %v1283_v20 }
 0x251   : > { %879 = vmatpush.bf16.msra.mxu3 %v1282_v21 }
 0x255   : > { %880 = vmatpush.bf16.msra.mxu3 %v1281_v22 }
 0x259   : > { %881 = vmatpush.bf16.msra.mxu3 %v1280_v23 }
 0x25d   : > { %882 = vmatpush.bf16.msra.mxu3 %v1279_v25 }
 0x260   : > { %883 = vmatmul.bf16.vlgmr.msra.gmra.mxu3 %v1271_v26 }
 0x270   : > { %888 = vmatmul.bf16.gmra.mxu3 %v1272_v6 }
 0x280   : > { %893 = vmatmul.bf16.gmra.mxu3 %v1273_v27 }
 0x290   : > { %898 = vmatmul.bf16.gmra.mxu3 %v1274_v28 }
 0x2a0   : > { %903 = vmatmul.bf16.gmra.mxu3 %v1275_v7 }
 0x2b0   : > { %908 = vmatmul.bf16.gmra.mxu3 %v1276_v29 }
 0x2c0   : > { %913 = vmatmul.bf16.gmra.mxu3 %v1277_v30 }
 0x2d0   : > { %918 = vmatmul.bf16.gmra.mxu3 %v1278_v31 }
 0x2e3   : > { %v884_v36 = vpop.f32.mrf.mxu3 }
 0x2e4   : > { %v929_v8 = vsel %vm1843_vm2, -inf, %v884_v36 }
 0x2eb   : > { %v886_v39 = vpop.f32.mrf.mxu3 }
 0x2ec   : > { %v930_v9 = vsel %vm1843_vm2, -inf, %v886_v39 }
 0x2ed   : > { %v1371_v10 = vpack.c.bf16 %v930_v9, %v929_v8 }
 0x2ef   : > { %1372 = vst [vmem:[%s1853_s15] sm:$0xff] %v1371_v10  }
 0x2f3   : > { %v889_v11 = vpop.f32.mrf.mxu3 }
 0x2f4   : > { %v931_v24 = vsel %vm1843_vm2, -inf, %v889_v11 }
 0x2fb   : > { %v891_v16 = vpop.f32.mrf.mxu3 }
 0x2fc   : > { %v932_v13 = vsel %vm1843_vm2, -inf, %v891_v16 }
 0x2fd   : > { %v1376_v33 = vpack.c.bf16 %v932_v13, %v931_v24 }
 0x2ff   : > { %1422 = vst [vmem:[%s1853_s15 + $0x8] sm:$0xff] %v1376_v33  }
 0x303   : > { %v894_v40 = vpop.f32.mrf.mxu3 }
 0x304   : > { %v933_v42 = vsel %vm1843_vm2, -inf, %v894_v40 }
 0x30b   : > { %v896_v41 = vpop.f32.mrf.mxu3 }
 0x30c   : > { %v934_v14 = vsel %vm1843_vm2, -inf, %v896_v41 }
 0x30d   : > { %v1381_v43 = vpack.c.bf16 %v934_v14, %v933_v42 }
 0x30f   : > { %1423 = vst [vmem:[%s1853_s15 + $0x10] sm:$0xff] %v1381_v43  }
 0x313   : > { %v899_v44 = vpop.f32.mrf.mxu3 }
 0x314   : > { %v935_v46 = vsel %vm1843_vm2, -inf, %v899_v44 }
 0x31b   : > { %v901_v45 = vpop.f32.mrf.mxu3 }
 0x31c   : > { %v936_v47 = vsel %vm1843_vm2, -inf, %v901_v45 }
 0x31d   : > { %v1386_v48 = vpack.c.bf16 %v936_v47, %v935_v46 }
 0x31f   : > { %1424 = vst [vmem:[%s1853_s15 + $0x18] sm:$0xff] %v1386_v48  }
 0x323   : > { %v904_v49 = vpop.f32.mrf.mxu3 }
 0x324   : > { %v937_v51 = vsel %vm1843_vm2, -inf, %v904_v49 }
 0x32b   : > { %v906_v50 = vpop.f32.mrf.mxu3 }
 0x32c   : > { %v938_v52 = vsel %vm1843_vm2, -inf, %v906_v50 }
 0x32d   : > { %v1391_v53 = vpack.c.bf16 %v938_v52, %v937_v51 }
 0x32f   : > { %1425 = vst [vmem:[%s1853_s15 + $0x20] sm:$0xff] %v1391_v53  }
 0x333   : > { %v909_v54 = vpop.f32.mrf.mxu3 }
 0x334   : > { %v939_v56 = vsel %vm1843_vm2, -inf, %v909_v54 }
 0x33b   : > { %v911_v55 = vpop.f32.mrf.mxu3 }
 0x33c   : > { %v940_v57 = vsel %vm1843_vm2, -inf, %v911_v55 }
 0x33d   : > { %v1396_v58 = vpack.c.bf16 %v940_v57, %v939_v56 }
 0x33f   : > { %1426 = vst [vmem:[%s1853_s15 + $0x28] sm:$0xff] %v1396_v58  }
 0x343   : > { %v914_v59 = vpop.f32.mrf.mxu3 }
 0x344   : > { %v941_v61 = vsel %vm1843_vm2, -inf, %v914_v59 }
 0x34b   : > { %v916_v60 = vpop.f32.mrf.mxu3 }
 0x34c   : > { %v942_v62 = vsel %vm1843_vm2, -inf, %v916_v60 }
 0x34d   : > { %v1401_v63 = vpack.c.bf16 %v942_v62, %v941_v61 }
 0x34f   : > { %1427 = vst [vmem:[%s1853_s15 + $0x30] sm:$0xff] %v1401_v63  }
 0x353   : > { %v919_v0 = vpop.f32.mrf.mxu3 }
 0x354   : > { %v943_v2 = vsel %vm1843_vm2, -inf, %v919_v0 }
 0x35b   : > { %v921_v1 = vpop.f32.mrf.mxu3 }
 0x35c   : > { %v944_v3 = vsel %vm1843_vm2, -inf, %v921_v1 }
 0x35d   : > { %v1406_v4 = vpack.c.bf16 %v944_v3, %v943_v2 }
 0x35f   : > { %1428 = vst [vmem:[%s1853_s15 + $0x38] sm:$0xff] %v1406_v4  }
 0x360   : > { %1530 = shalt.err (!%p1527_p5)
}
 0x361   : > { %s1584_s29 = smov 64   ;;  %s1585_s15 = smov 4  }
 0x362   : > { %1445 = dma.vmem_to_hbm [thread:$0]  (%p1656_p4), %s993_s12, 1024, %s995_s13, %s978_s21, %s1584_s29, %s1584_s29, %s1585_s15  }
 0x363 PF: > { %p1451_p6 = scmp.ge.s32.totalorder %s1581_s23, 2  ;;  %s1009_s8 = sand.u32 1, %s1561_s18  }
 0x364   : > { %s1010_s9 = scalar_lea.sflag [#allocation5], %s1009_s8 }
 0x365   : > { %p1448_p7 = pnand %p1451_p6, %p1663_p8 }
 0x367   : > { %p1449_p9 = pneg %p1448_p7 }
 0x369   : > { %1556 = dma.done.wait (%p1449_p9), %s1010_s9, 1024  }
 0x36a   : > { %1558 = vsyncadd (%p1449_p9), %s1010_s9, 4294966272  ;;  %s18_s23 = sadd.s32 1, %s1581_s23   ;;  %s1940_s18 = smov %s1565_s19 }
 0x36b   : > { %p15_p10 = scmp.ge.s32.totalorder %s18_s23, 4   ;;  %s1941_s19 = smov %s1569_s20 }
 0x36c   : > { %s1942_s20 = smov %s1669_s6  ;;  %s1943_s21 = smov %s1577_s22 }
 0x36d   : > { %s1944_s22 = smov %s1946_s26  ;;  %17 = sbr.rel (!%p15_p10) target bundleno = 4 (0x4), region = 82 }
 0x372   :  { %1016 = vsyncpa [#allocation5], 1 }
 0x373   :  { %1018 = vsyncpa [#allocation5 + $0x1], 1 }

</bundles_post_ra>
